<compile_context>
chip_gen: v7x
topology: tpu7x:2x2x1
jax: 0.10.0
libtpu: 0.0.40
codegen_flags: <defaults>
</compile_context>

<pallas_src>
import jax
import jax.numpy as jnp
from jax.experimental import pallas as pl
from jax.experimental.pallas import tpu as pltpu

EPS = 1e-5  # nn.BatchNorm1d default eps


# ----------------------------------------------------------------------------
# Kernel
# ----------------------------------------------------------------------------
def _make_kernel(BN, L1, s, C_in, C_out, k, p1l, p2l, p2r, qmin, qmax,
                 first_block, se, has_sc_conv, mm_dtype):
    """Builds the kernel body for one batch chunk of BN samples."""
    nleft = -qmin          # zero rows on the left of the conv1 scratch
    nright = qmax          # zero rows on the right of the conv1 scratch

    def kernel(x_ref, s1_ref, b1_ref, w1_ref, s2_ref, b2_ref, w2_ref, *rest):
        i = 0
        if se:
            wse1_ref, wse2_ref = rest[i], rest[i + 1]
            i += 2
        if has_sc_conv:
            wsc_ref = rest[i]
            i += 1
        o_ref, apad, bpad = rest[i], rest[i + 1], rest[i + 2]

        # ---- BN1 (inference: folded scale/bias) + ReLU ----------------------
        x = x_ref[...].astype(jnp.float32)                  # (BN, s, L1, C_in)
        a = jnp.maximum(x * s1_ref[...] + b1_ref[...], 0.0)

        # ---- shortcut base: MaxPool1d(stride) == max over the phase axis ----
        mp = jnp.max(a if first_block else x, axis=1)       # (BN, L1, C_in)

        # ---- conv1 input scratch (phase-split, padded); zero ONLY pad rows --
        if nleft:
            apad[:, :, pl.ds(0, nleft), :] = jnp.zeros(
                (BN, s, nleft, C_in), jnp.float32)
        if nright:
            apad[:, :, pl.ds(nleft + L1, nright), :] = jnp.zeros(
                (BN, s, nright, C_in), jnp.float32)
        apad[:, :, pl.ds(nleft, L1), :] = a

        # ---- conv1: kx1, stride s — k accumulated MXU matmuls ---------------
        out1 = jnp.zeros((BN * L1, C_out), jnp.float32)
        for t in range(k):
            d = t - p1l
            j = d % s                       # phase of this tap
            r0 = d // s - qmin              # contiguous row offset in scratch
            tap = apad[:, j, pl.ds(r0, L1), :].reshape(BN * L1, C_in)
            out1 = out1 + jnp.dot(tap.astype(mm_dtype), w1_ref[t],
                                  preferred_element_type=jnp.float32)

        # ---- BN2 + ReLU (+ Dropout) -----------------------------------------
        # TODO(synk): Dropout is treated as inference-mode identity (no RNG).
        b = jnp.maximum(out1 * s2_ref[...] + b2_ref[...], 0.0)

        # ---- conv2 input scratch (padded, stride 1) --------------------------
        if p2l:
            bpad[:, pl.ds(0, p2l), :] = jnp.zeros((BN, p2l, C_out), jnp.float32)
        if p2r:
            bpad[:, pl.ds(p2l + L1, p2r), :] = jnp.zeros(
                (BN, p2r, C_out), jnp.float32)
        bpad[:, pl.ds(p2l, L1), :] = b.reshape(BN, L1, C_out)

        # ---- conv2: kx1, stride 1 — k accumulated MXU matmuls ----------------
        out2 = jnp.zeros((BN * L1, C_out), jnp.float32)
        for t in range(k):
            tap = bpad[:, pl.ds(t, L1), :].reshape(BN * L1, C_out)
            out2 = out2 + jnp.dot(tap.astype(mm_dtype), w2_ref[t],
                                  preferred_element_type=jnp.float32)
        out2 = out2.reshape(BN, L1, C_out)

        # ---- Squeeze-and-Excitation gate -------------------------------------
        if se:
            pooled = jnp.mean(out2, axis=1)                  # (BN, C_out)
            hid = jnp.maximum(
                jnp.dot(pooled.astype(mm_dtype), wse1_ref[...],
                        preferred_element_type=jnp.float32), 0.0)
            gate = jax.nn.sigmoid(
                jnp.dot(hid.astype(mm_dtype), wse2_ref[...],
                        preferred_element_type=jnp.float32))  # (BN, C_out)
            out2 = out2 * gate[:, None, :]

        # ---- shortcut + residual add ------------------------------------------
        if has_sc_conv:
            sc = jnp.dot(mp.reshape(BN * L1, C_in).astype(mm_dtype),
                         wsc_ref[...],
                         preferred_element_type=jnp.float32)
            out = out2 + sc.reshape(BN, L1, C_out)
        elif C_in == C_out:
            out = out2 + mp
        else:
            # F.pad(x, (0, 0, 0, C_out - C_in)): add mp into the first C_in
            # channels (no full-size zero buffer is materialized).
            head = jax.lax.dynamic_slice(out2, (0, 0, 0), (BN, L1, C_in)) + mp
            out = jax.lax.dynamic_update_slice(out2, head, (0, 0, 0))

        # ---- single whole-block store -----------------------------------------
        o_ref[...] = out.astype(o_ref.dtype)

    return kernel


# ----------------------------------------------------------------------------
# Wrapper (layout transposes, BN folding, per-tap weight layout, batch tiling)
# ----------------------------------------------------------------------------
def _pick_batch_block(N, L1):
    """Target ~512 matmul rows per step; prefer >=2 grid steps when possible."""
    target = max(1, -(-512 // max(L1, 1)))
    divs = [d for d in range(1, N + 1) if N % d == 0]
    fits = [d for d in divs if d <= target]
    bn = max(fits) if fits else 1
    if bn == N and N > 1:
        proper = [d for d in divs if d < N]
        if proper:
            bn = max(proper)
    return bn


def resnet_basic_block(x_ncl, params, *, kernel_size, stride,
                       first_block=False, se=True, has_sc_conv=True,
                       batch_block=None, matmul_dtype=jnp.bfloat16,
                       out_dtype=jnp.float32):
    N, C_in, L = x_ncl.shape
    C_out = params['w1'].shape[0]
    k = kernel_size
    s = stride
    assert L % s == 0, "requires L divisible by stride (MaxPool1d truncation)"
    L1 = L // s

    pad1 = k - s
    p1l = pad1 // 2
    pad2 = k - 1
    p2l = pad2 // 2
    p2r = pad2 - p2l
    # phase-split scratch geometry for conv1
    qmin = (-p1l) // s
    qmax = (k - 1 - p1l) // s
    Lq = L1 + qmax - qmin

    BN = _pick_batch_block(N, L1) if batch_block is None else batch_block
    assert N % BN == 0, "batch_block must divide the batch"

    # Fold inference-mode BatchNorm into per-channel scale / bias (f32).
    s1 = (params['g1'] / jnp.sqrt(params['v1'] + EPS)).astype(jnp.float32)
    b1 = (params['b1'] - params['m1'] * s1).astype(jnp.float32)
    s2 = (params['g2'] / jnp.sqrt(params['v2'] + EPS)).astype(jnp.float32)
    b2 = (params['b2'] - params['m2'] * s2).astype(jnp.float32)

    # PyTorch conv weights (O, I, K) -> per-tap layout (K, I, O), MXU dtype.
    w1_t = jnp.transpose(params['w1'], (2, 1, 0)).astype(matmul_dtype)
    w2_t = jnp.transpose(params['w2'], (2, 1, 0)).astype(matmul_dtype)

    # Phase-split NCL -> (N, s, L1, C): stride taps, MaxPool and all scratch
    # accesses become contiguous (no strided ref reads inside the kernel).
    x_ph = jnp.transpose(x_ncl.reshape(N, C_in, L1, s), (0, 3, 2, 1))

    inputs = [x_ph, s1.reshape(1, C_in), b1.reshape(1, C_in), w1_t,
              s2.reshape(1, C_out), b2.reshape(1, C_out), w2_t]
    in_specs = [
        pl.BlockSpec((BN, s, L1, C_in), lambda g: (g, 0, 0, 0)),   # x (phase)
        pl.BlockSpec((1, C_in), lambda g: (0, 0)),                 # bn1 scale
        pl.BlockSpec((1, C_in), lambda g: (0, 0)),                 # bn1 bias
        pl.BlockSpec((k, C_in, C_out), lambda g: (0, 0, 0)),       # conv1 w
        pl.BlockSpec((1, C_out), lambda g: (0, 0)),                # bn2 scale
        pl.BlockSpec((1, C_out), lambda g: (0, 0)),                # bn2 bias
        pl.BlockSpec((k, C_out, C_out), lambda g: (0, 0, 0)),      # conv2 w
    ]
    if se:
        C_se = params['wse1'].shape[0]
        inputs += [params['wse1'].T.astype(matmul_dtype),          # (C_out, C_se)
                   params['wse2'].T.astype(matmul_dtype)]          # (C_se, C_out)
        in_specs += [pl.BlockSpec((C_out, C_se), lambda g: (0, 0)),
                     pl.BlockSpec((C_se, C_out), lambda g: (0, 0))]
    if has_sc_conv:
        inputs += [params['wsc'].T.astype(matmul_dtype)]           # (C_in, C_out)
        in_specs += [pl.BlockSpec((C_in, C_out), lambda g: (0, 0))]

    kernel = _make_kernel(BN, L1, s, C_in, C_out, k, p1l, p2l, p2r, qmin, qmax,
                          first_block, se, has_sc_conv, matmul_dtype)

    # Explicit VMEM budget (scoped defaults: 16 MiB v5e / 32 MiB v6e,v7x).
    in_bytes = jnp.dtype(x_ncl.dtype).itemsize
    out_bytes = jnp.dtype(out_dtype).itemsize
    est = (2 * (BN * s * L1 * C_in * in_bytes + BN * L1 * C_out * out_bytes)
           + BN * s * Lq * C_in * 4 + BN * (L1 + pad2) * C_out * 4
           + sum(int(a.size) * jnp.dtype(a.dtype).itemsize for a in inputs[1:]))
    vmem_limit = int(min(max(2 * est + (8 << 20), 32 << 20), 64 << 20))

    out_nlc = pl.pallas_call(
        kernel,
        out_shape=jax.ShapeDtypeStruct((N, L1, C_out), out_dtype),
        grid=(N // BN,),
        in_specs=in_specs,
        out_specs=pl.BlockSpec((BN, L1, C_out), lambda g: (g, 0, 0)),
        scratch_shapes=[
            pltpu.VMEM((BN, s, Lq, C_in), jnp.float32),       # padded conv1 input
            pltpu.VMEM((BN, L1 + pad2, C_out), jnp.float32),  # padded conv2 input
        ],
        compiler_params=pltpu.CompilerParams(
            dimension_semantics=("parallel",),
            vmem_limit_bytes=vmem_limit),
    )(*inputs)

    return jnp.transpose(out_nlc, (0, 2, 1))   # (N, L1, C_out) -> NCL


# ----------------------------------------------------------------------------
# Pure-JAX reference (mirrors the PyTorch forward, NCL layout, f32)
# ----------------------------------------------------------------------------
def ref_forward(x, P, *, k, stride, first_block, se, has_sc_conv):
    def bn(z, g, b, m, v):
        sc = g / jnp.sqrt(v + EPS)
        return (z - m[None, :, None]) * sc[None, :, None] + b[None, :, None]

    def conv1d(z, w, s, pl_, pr_):
        return jax.lax.conv_general_dilated(
            z, w, window_strides=(s,), padding=[(pl_, pr_)],
            dimension_numbers=('NCH', 'OIH', 'NCH'))

    a = jax.nn.relu(bn(x, P['g1'], P['b1'], P['m1'], P['v1']))
    pad1 = k - stride
    out = conv1d(a, P['w1'], stride, pad1 // 2, pad1 - pad1 // 2)
    out = jax.nn.relu(bn(out, P['g2'], P['b2'], P['m2'], P['v2']))
    pad2 = k - 1
    out = conv1d(out, P['w2'], 1, pad2 // 2, pad2 - pad2 // 2)
    if se:
        g = jnp.mean(out, axis=2, keepdims=True)
        g = jax.nn.relu(jnp.einsum('oi,nil->nol', P['wse1'], g))
        g = jax.nn.sigmoid(jnp.einsum('oi,nil->nol', P['wse2'], g))
        out = out * g
    sc = a if first_block else x
    if stride != 1:
        N, C, L = sc.shape
        sc = sc[:, :, :(L // stride) * stride].reshape(
            N, C, L // stride, stride).max(-1)
    if has_sc_conv:
        sc = jnp.einsum('oi,nil->nol', P['wsc'], sc)
    oc, xc = out.shape[1], sc.shape[1]
    if oc == xc:
        out = out + sc
    else:
        out = out + jnp.pad(sc, ((0, 0), (0, oc - xc), (0, 0)))
    return out


# ----------------------------------------------------------------------------
if __name__ == "__main__":
    key = jax.random.PRNGKey(0)
    # cfg: kernel_size=3, cardinality=1, dropout_rate=0.0, block='SE',
    #      shortcut='conv'
    N, C_in, C_out, L = 2, 16, 32, 32
    k, stride = 3, 2
    first_block = False
    se = True
    se_reduction = 4
    C_se = C_out // se_reduction
    has_sc_conv = (C_in != C_out)          # cfg.shortcut == 'conv'

    keys = jax.random.split(key, 14)
    params = {
        'g1': jax.random.uniform(keys[0], (C_in,), minval=0.5, maxval=1.5),
        'b1': 0.1 * jax.random.normal(keys[1], (C_in,)),
        'm1': 0.1 * jax.random.normal(keys[2], (C_in,)),
        'v1': jax.random.uniform(keys[3], (C_in,), minval=0.5, maxval=1.5),
        'w1': 0.2 * jax.random.normal(keys[4], (C_out, C_in, k)),
        'g2': jax.random.uniform(keys[5], (C_out,), minval=0.5, maxval=1.5),
        'b2': 0.1 * jax.random.normal(keys[6], (C_out,)),
        'm2': 0.1 * jax.random.normal(keys[7], (C_out,)),
        'v2': jax.random.uniform(keys[8], (C_out,), minval=0.5, maxval=1.5),
        'w2': 0.2 * jax.random.normal(keys[9], (C_out, C_out, k)),
        'wse1': 0.2 * jax.random.normal(keys[10], (C_se, C_out)),
        'wse2': 0.2 * jax.random.normal(keys[11], (C_out, C_se)),
        'wsc': 0.2 * jax.random.normal(keys[12], (C_out, C_in)),
    }
    x = jax.random.normal(keys[13], (N, C_in, L), jnp.float32)

    ref = ref_forward(x, params, k=k, stride=stride, first_block=first_block,
                      se=se, has_sc_conv=has_sc_conv)

    # Tight numerical check with f32 MXU operands.
    out_f32 = resnet_basic_block(x, params, kernel_size=k, stride=stride,
                                 first_block=first_block, se=se,
                                 has_sc_conv=has_sc_conv,
                                 matmul_dtype=jnp.float32)
    out_f32 = jax.block_until_ready(out_f32)
    assert out_f32.shape == (N, C_out, L // stride), out_f32.shape
    err_f32 = float(jnp.max(jnp.abs(out_f32 - ref)))
    assert err_f32 < 1e-3, f"f32 kernel/reference mismatch: {err_f32}"

    # Default perf path: bf16 MXU operands (v6e/v7x native), f32 accumulate.
    out = resnet_basic_block(x, params, kernel_size=k, stride=stride,
                             first_block=first_block, se=se,
                             has_sc_conv=has_sc_conv)
    out = jax.block_until_ready(out)
    assert out.shape == (N, C_out, L // stride), out.shape
    err_bf16 = float(jnp.max(jnp.abs(out - ref)))
    assert err_bf16 < 1e-1, f"bf16 kernel/reference mismatch: {err_bf16}"

    print("KERNEL_OK")
</pallas_src>

<mosaic_0001>
module attributes {stable_mosaic.version = 11 : i64} {
  func.func @kernel(%arg0: i32, %arg1: memref<1x2x16x16xf32, #tpu.memory_space<vmem>>, %arg2: memref<1x16xf32, #tpu.memory_space<vmem>>, %arg3: memref<1x16xf32, #tpu.memory_space<vmem>>, %arg4: memref<3x16x32xf32, #tpu.memory_space<vmem>>, %arg5: memref<1x32xf32, #tpu.memory_space<vmem>>, %arg6: memref<1x32xf32, #tpu.memory_space<vmem>>, %arg7: memref<3x32x32xf32, #tpu.memory_space<vmem>>, %arg8: memref<32x8xf32, #tpu.memory_space<vmem>>, %arg9: memref<8x32xf32, #tpu.memory_space<vmem>>, %arg10: memref<16x32xf32, #tpu.memory_space<vmem>>, %arg11: memref<1x16x32xf32, #tpu.memory_space<vmem>>, %arg12: memref<1x2x17x16xf32, #tpu.memory_space<vmem>>, %arg13: memref<1x18x32xf32, #tpu.memory_space<vmem>>) attributes {dimension_semantics = [#tpu.dimension_semantics<parallel>], iteration_bounds = array<i64: 2>, scalar_prefetch = 0 : i64, scratch_operands = 2 : i64, tpu.core_type = #tpu.core_type<tc>, window_params = [{transform_indices = @transform_0, window_bounds = array<i64: 1, 2, 16, 16>}, {pipeline_mode = #tpu.pipeline_mode<synchronous>, transform_indices = @transform_1, window_bounds = array<i64: 1, 16>}, {pipeline_mode = #tpu.pipeline_mode<synchronous>, transform_indices = @transform_2, window_bounds = array<i64: 1, 16>}, {pipeline_mode = #tpu.pipeline_mode<synchronous>, transform_indices = @transform_3, window_bounds = array<i64: 3, 16, 32>}, {pipeline_mode = #tpu.pipeline_mode<synchronous>, transform_indices = @transform_4, window_bounds = array<i64: 1, 32>}, {pipeline_mode = #tpu.pipeline_mode<synchronous>, transform_indices = @transform_5, window_bounds = array<i64: 1, 32>}, {pipeline_mode = #tpu.pipeline_mode<synchronous>, transform_indices = @transform_6, window_bounds = array<i64: 3, 32, 32>}, {pipeline_mode = #tpu.pipeline_mode<synchronous>, transform_indices = @transform_7, window_bounds = array<i64: 32, 8>}, {pipeline_mode = #tpu.pipeline_mode<synchronous>, transform_indices = @transform_8, window_bounds = array<i64: 8, 32>}, {pipeline_mode = #tpu.pipeline_mode<synchronous>, transform_indices = @transform_9, window_bounds = array<i64: 16, 32>}, {transform_indices = @transform_10, window_bounds = array<i64: 1, 16, 32>}]} {
    %c0 = arith.constant 0 : index
    %c0_0 = arith.constant 0 : index
    %c0_1 = arith.constant 0 : index
    %c0_2 = arith.constant 0 : index
    %0 = vector.load %arg1[%c0, %c0_0, %c0_1, %c0_2] : memref<1x2x16x16xf32, #tpu.memory_space<vmem>>, vector<1x2x16x16xf32>
    %c0_3 = arith.constant 0 : index
    %c0_4 = arith.constant 0 : index
    %1 = vector.load %arg2[%c0_3, %c0_4] : memref<1x16xf32, #tpu.memory_space<vmem>>, vector<1x16xf32>
    %2 = vector.shape_cast %1 : vector<1x16xf32> to vector<1x1x1x16xf32>
    %3 = vector.broadcast %2 : vector<1x1x1x16xf32> to vector<1x2x16x16xf32>
    %4 = arith.mulf %0, %3 : vector<1x2x16x16xf32>
    %c0_5 = arith.constant 0 : index
    %c0_6 = arith.constant 0 : index
    %5 = vector.load %arg3[%c0_5, %c0_6] : memref<1x16xf32, #tpu.memory_space<vmem>>, vector<1x16xf32>
    %6 = vector.shape_cast %5 : vector<1x16xf32> to vector<1x1x1x16xf32>
    %7 = vector.broadcast %6 : vector<1x1x1x16xf32> to vector<1x2x16x16xf32>
    %8 = arith.addf %4, %7 : vector<1x2x16x16xf32>
    %cst = arith.constant 0.000000e+00 : f32
    %9 = vector.broadcast %cst : f32 to vector<1x2x16x16xf32>
    %10 = arith.maximumf %8, %9 : vector<1x2x16x16xf32>
    %cst_7 = arith.constant dense<0xFF800000> : vector<1x16x16xf32>
    %11 = vector.multi_reduction <maximumf>, %0, %cst_7 [1] : vector<1x2x16x16xf32> to vector<1x16x16xf32>
    %cst_8 = arith.constant 0.000000e+00 : f32
    %12 = vector.broadcast %cst_8 : f32 to vector<1x2x1x16xf32>
    %c0_9 = arith.constant 0 : index
    %c0_10 = arith.constant 0 : index
    %c16 = arith.constant 16 : index
    %c0_11 = arith.constant 0 : index
    %13 = vector.load %arg12[%c0_9, %c0_10, %c16, %c0_11] : memref<1x2x17x16xf32, #tpu.memory_space<vmem>>, vector<1x2x1x16xf32>
    tpu.vector_store %arg12[%c0_9, %c0_10, %c16, %c0_11], %12 {strides = array<i32>} : memref<1x2x17x16xf32, #tpu.memory_space<vmem>>, vector<1x2x1x16xf32>,
    %c0_12 = arith.constant 0 : index
    %c0_13 = arith.constant 0 : index
    %c0_14 = arith.constant 0 : index
    %c0_15 = arith.constant 0 : index
    %14 = vector.load %arg12[%c0_12, %c0_13, %c0_14, %c0_15] : memref<1x2x17x16xf32, #tpu.memory_space<vmem>>, vector<1x2x16x16xf32>
    tpu.vector_store %arg12[%c0_12, %c0_13, %c0_14, %c0_15], %10 {strides = array<i32>} : memref<1x2x17x16xf32, #tpu.memory_space<vmem>>, vector<1x2x16x16xf32>,
    %cst_16 = arith.constant 0.000000e+00 : f32
    %15 = vector.broadcast %cst_16 : f32 to vector<16x32xf32>
    %c0_17 = arith.constant 0 : index
    %c0_18 = arith.constant 0 : index
    %c0_19 = arith.constant 0 : index
    %c0_20 = arith.constant 0 : index
    %16 = vector.load %arg12[%c0_17, %c0_18, %c0_19, %c0_20] : memref<1x2x17x16xf32, #tpu.memory_space<vmem>>, vector<1x1x16x16xf32>
    %17 = vector.shape_cast %16 : vector<1x1x16x16xf32> to vector<1x16x16xf32>
    %18 = vector.shape_cast %17 : vector<1x16x16xf32> to vector<16x16xf32>
    %c0_21 = arith.constant 0 : index
    %c0_22 = arith.constant 0 : index
    %c0_23 = arith.constant 0 : index
    %19 = vector.load %arg4[%c0_21, %c0_22, %c0_23] : memref<3x16x32xf32, #tpu.memory_space<vmem>>, vector<1x16x32xf32>
    %20 = vector.shape_cast %19 : vector<1x16x32xf32> to vector<16x32xf32>
    %cst_24 = arith.constant dense<0.000000e+00> : vector<16x32xf32>
    %21 = tpu.matmul %18, %20, %cst_24 {dimension_numbers = #tpu.dot_dimension_numbers<[1], [0], [0], [1], [0, 0, 1, 1], [], []>} : vector<16x16xf32>, vector<16x32xf32>, vector<16x32xf32> -> vector<16x32xf32>
    %22 = arith.addf %15, %21 : vector<16x32xf32>
    %c0_25 = arith.constant 0 : index
    %c1 = arith.constant 1 : index
    %c0_26 = arith.constant 0 : index
    %c0_27 = arith.constant 0 : index
    %23 = vector.load %arg12[%c0_25, %c1, %c0_26, %c0_27] : memref<1x2x17x16xf32, #tpu.memory_space<vmem>>, vector<1x1x16x16xf32>
    %24 = vector.shape_cast %23 : vector<1x1x16x16xf32> to vector<1x16x16xf32>
    %25 = vector.shape_cast %24 : vector<1x16x16xf32> to vector<16x16xf32>
    %c1_28 = arith.constant 1 : index
    %c0_29 = arith.constant 0 : index
    %c0_30 = arith.constant 0 : index
    %26 = vector.load %arg4[%c1_28, %c0_29, %c0_30] : memref<3x16x32xf32, #tpu.memory_space<vmem>>, vector<1x16x32xf32>
    %27 = vector.shape_cast %26 : vector<1x16x32xf32> to vector<16x32xf32>
    %cst_31 = arith.constant dense<0.000000e+00> : vector<16x32xf32>
    %28 = tpu.matmul %25, %27, %cst_31 {dimension_numbers = #tpu.dot_dimension_numbers<[1], [0], [0], [1], [0, 0, 1, 1], [], []>} : vector<16x16xf32>, vector<16x32xf32>, vector<16x32xf32> -> vector<16x32xf32>
    %29 = arith.addf %22, %28 : vector<16x32xf32>
    %c0_32 = arith.constant 0 : index
    %c0_33 = arith.constant 0 : index
    %c1_34 = arith.constant 1 : index
    %c0_35 = arith.constant 0 : index
    %30 = vector.load %arg12[%c0_32, %c0_33, %c1_34, %c0_35] : memref<1x2x17x16xf32, #tpu.memory_space<vmem>>, vector<1x1x16x16xf32>
    %31 = vector.shape_cast %30 : vector<1x1x16x16xf32> to vector<1x16x16xf32>
    %32 = vector.shape_cast %31 : vector<1x16x16xf32> to vector<16x16xf32>
    %c2 = arith.constant 2 : index
    %c0_36 = arith.constant 0 : index
    %c0_37 = arith.constant 0 : index
    %33 = vector.load %arg4[%c2, %c0_36, %c0_37] : memref<3x16x32xf32, #tpu.memory_space<vmem>>, vector<1x16x32xf32>
    %34 = vector.shape_cast %33 : vector<1x16x32xf32> to vector<16x32xf32>
    %cst_38 = arith.constant dense<0.000000e+00> : vector<16x32xf32>
    %35 = tpu.matmul %32, %34, %cst_38 {dimension_numbers = #tpu.dot_dimension_numbers<[1], [0], [0], [1], [0, 0, 1, 1], [], []>} : vector<16x16xf32>, vector<16x32xf32>, vector<16x32xf32> -> vector<16x32xf32>
    %36 = arith.addf %29, %35 : vector<16x32xf32>
    %c0_39 = arith.constant 0 : index
    %c0_40 = arith.constant 0 : index
    %37 = vector.load %arg5[%c0_39, %c0_40] : memref<1x32xf32, #tpu.memory_space<vmem>>, vector<1x32xf32>
    %38 = vector.broadcast %37 : vector<1x32xf32> to vector<16x32xf32>
    %39 = arith.mulf %36, %38 : vector<16x32xf32>
    %c0_41 = arith.constant 0 : index
    %c0_42 = arith.constant 0 : index
    %40 = vector.load %arg6[%c0_41, %c0_42] : memref<1x32xf32, #tpu.memory_space<vmem>>, vector<1x32xf32>
    %41 = vector.broadcast %40 : vector<1x32xf32> to vector<16x32xf32>
    %42 = arith.addf %39, %41 : vector<16x32xf32>
    %cst_43 = arith.constant 0.000000e+00 : f32
    %43 = vector.broadcast %cst_43 : f32 to vector<16x32xf32>
    %44 = arith.maximumf %42, %43 : vector<16x32xf32>
    %cst_44 = arith.constant 0.000000e+00 : f32
    %45 = vector.broadcast %cst_44 : f32 to vector<1x1x32xf32>
    %c0_45 = arith.constant 0 : index
    %c0_46 = arith.constant 0 : index
    %c0_47 = arith.constant 0 : index
    %46 = vector.load %arg13[%c0_45, %c0_46, %c0_47] : memref<1x18x32xf32, #tpu.memory_space<vmem>>, vector<1x1x32xf32>
    tpu.vector_store %arg13[%c0_45, %c0_46, %c0_47], %45 {strides = array<i32>} : memref<1x18x32xf32, #tpu.memory_space<vmem>>, vector<1x1x32xf32>,
    %cst_48 = arith.constant 0.000000e+00 : f32
    %47 = vector.broadcast %cst_48 : f32 to vector<1x1x32xf32>
    %c0_49 = arith.constant 0 : index
    %c17 = arith.constant 17 : index
    %c0_50 = arith.constant 0 : index
    %48 = vector.load %arg13[%c0_49, %c17, %c0_50] : memref<1x18x32xf32, #tpu.memory_space<vmem>>, vector<1x1x32xf32>
    tpu.vector_store %arg13[%c0_49, %c17, %c0_50], %47 {strides = array<i32>} : memref<1x18x32xf32, #tpu.memory_space<vmem>>, vector<1x1x32xf32>,
    %49 = vector.shape_cast %44 : vector<16x32xf32> to vector<1x16x32xf32>
    %c0_51 = arith.constant 0 : index
    %c1_52 = arith.constant 1 : index
    %c0_53 = arith.constant 0 : index
    %50 = vector.load %arg13[%c0_51, %c1_52, %c0_53] : memref<1x18x32xf32, #tpu.memory_space<vmem>>, vector<1x16x32xf32>
    tpu.vector_store %arg13[%c0_51, %c1_52, %c0_53], %49 {strides = array<i32>} : memref<1x18x32xf32, #tpu.memory_space<vmem>>, vector<1x16x32xf32>,
    %cst_54 = arith.constant 0.000000e+00 : f32
    %51 = vector.broadcast %cst_54 : f32 to vector<16x32xf32>
    %c0_55 = arith.constant 0 : index
    %c0_56 = arith.constant 0 : index
    %c0_57 = arith.constant 0 : index
    %52 = vector.load %arg13[%c0_55, %c0_56, %c0_57] : memref<1x18x32xf32, #tpu.memory_space<vmem>>, vector<1x16x32xf32>
    %53 = vector.shape_cast %52 : vector<1x16x32xf32> to vector<16x32xf32>
    %c0_58 = arith.constant 0 : index
    %c0_59 = arith.constant 0 : index
    %c0_60 = arith.constant 0 : index
    %54 = vector.load %arg7[%c0_58, %c0_59, %c0_60] : memref<3x32x32xf32, #tpu.memory_space<vmem>>, vector<1x32x32xf32>
    %55 = vector.shape_cast %54 : vector<1x32x32xf32> to vector<32x32xf32>
    %cst_61 = arith.constant dense<0.000000e+00> : vector<16x32xf32>
    %56 = tpu.matmul %53, %55, %cst_61 {dimension_numbers = #tpu.dot_dimension_numbers<[1], [0], [0], [1], [0, 0, 1, 1], [], []>} : vector<16x32xf32>, vector<32x32xf32>, vector<16x32xf32> -> vector<16x32xf32>
    %57 = arith.addf %51, %56 : vector<16x32xf32>
    %c0_62 = arith.constant 0 : index
    %c1_63 = arith.constant 1 : index
    %c0_64 = arith.constant 0 : index
    %58 = vector.load %arg13[%c0_62, %c1_63, %c0_64] : memref<1x18x32xf32, #tpu.memory_space<vmem>>, vector<1x16x32xf32>
    %59 = vector.shape_cast %58 : vector<1x16x32xf32> to vector<16x32xf32>
    %c1_65 = arith.constant 1 : index
    %c0_66 = arith.constant 0 : index
    %c0_67 = arith.constant 0 : index
    %60 = vector.load %arg7[%c1_65, %c0_66, %c0_67] : memref<3x32x32xf32, #tpu.memory_space<vmem>>, vector<1x32x32xf32>
    %61 = vector.shape_cast %60 : vector<1x32x32xf32> to vector<32x32xf32>
    %cst_68 = arith.constant dense<0.000000e+00> : vector<16x32xf32>
    %62 = tpu.matmul %59, %61, %cst_68 {dimension_numbers = #tpu.dot_dimension_numbers<[1], [0], [0], [1], [0, 0, 1, 1], [], []>} : vector<16x32xf32>, vector<32x32xf32>, vector<16x32xf32> -> vector<16x32xf32>
    %63 = arith.addf %57, %62 : vector<16x32xf32>
    %c0_69 = arith.constant 0 : index
    %c2_70 = arith.constant 2 : index
    %c0_71 = arith.constant 0 : index
    %64 = vector.load %arg13[%c0_69, %c2_70, %c0_71] : memref<1x18x32xf32, #tpu.memory_space<vmem>>, vector<1x16x32xf32>
    %65 = vector.shape_cast %64 : vector<1x16x32xf32> to vector<16x32xf32>
    %c2_72 = arith.constant 2 : index
    %c0_73 = arith.constant 0 : index
    %c0_74 = arith.constant 0 : index
    %66 = vector.load %arg7[%c2_72, %c0_73, %c0_74] : memref<3x32x32xf32, #tpu.memory_space<vmem>>, vector<1x32x32xf32>
    %67 = vector.shape_cast %66 : vector<1x32x32xf32> to vector<32x32xf32>
    %cst_75 = arith.constant dense<0.000000e+00> : vector<16x32xf32>
    %68 = tpu.matmul %65, %67, %cst_75 {dimension_numbers = #tpu.dot_dimension_numbers<[1], [0], [0], [1], [0, 0, 1, 1], [], []>} : vector<16x32xf32>, vector<32x32xf32>, vector<16x32xf32> -> vector<16x32xf32>
    %69 = arith.addf %63, %68 : vector<16x32xf32>
    %70 = vector.shape_cast %69 : vector<16x32xf32> to vector<1x16x32xf32>
    %cst_76 = arith.constant dense<0.000000e+00> : vector<1x32xf32>
    %71 = vector.multi_reduction <add>, %70, %cst_76 [1] : vector<1x16x32xf32> to vector<1x32xf32>
    %cst_77 = arith.constant 1.600000e+01 : f32
    %72 = vector.broadcast %cst_77 : f32 to vector<1x32xf32>
    %73 = arith.divf %71, %72 : vector<1x32xf32>
    %c0_78 = arith.constant 0 : index
    %c0_79 = arith.constant 0 : index
    %74 = vector.load %arg8[%c0_78, %c0_79] : memref<32x8xf32, #tpu.memory_space<vmem>>, vector<32x8xf32>
    %cst_80 = arith.constant dense<0.000000e+00> : vector<1x8xf32>
    %75 = tpu.matmul %73, %74, %cst_80 {dimension_numbers = #tpu.dot_dimension_numbers<[1], [0], [0], [1], [0, 0, 1, 1], [], []>} : vector<1x32xf32>, vector<32x8xf32>, vector<1x8xf32> -> vector<1x8xf32>
    %cst_81 = arith.constant 0.000000e+00 : f32
    %76 = vector.broadcast %cst_81 : f32 to vector<1x8xf32>
    %77 = arith.maximumf %75, %76 : vector<1x8xf32>
    %c0_82 = arith.constant 0 : index
    %c0_83 = arith.constant 0 : index
    %78 = vector.load %arg9[%c0_82, %c0_83] : memref<8x32xf32, #tpu.memory_space<vmem>>, vector<8x32xf32>
    %cst_84 = arith.constant dense<0.000000e+00> : vector<1x32xf32>
    %79 = tpu.matmul %77, %78, %cst_84 {dimension_numbers = #tpu.dot_dimension_numbers<[1], [0], [0], [1], [0, 0, 1, 1], [], []>} : vector<1x8xf32>, vector<8x32xf32>, vector<1x32xf32> -> vector<1x32xf32>
    %80 = arith.negf %79 : vector<1x32xf32>
    %81 = math.exp %80 : vector<1x32xf32>
    %cst_85 = arith.constant 1.000000e+00 : f32
    %82 = vector.broadcast %cst_85 : f32 to vector<1x32xf32>
    %83 = arith.addf %82, %81 : vector<1x32xf32>
    %84 = arith.divf %82, %83 : vector<1x32xf32>
    %85 = vector.shape_cast %84 : vector<1x32xf32> to vector<1x1x32xf32>
    %86 = vector.broadcast %85 : vector<1x1x32xf32> to vector<1x16x32xf32>
    %87 = arith.mulf %70, %86 : vector<1x16x32xf32>
    %88 = vector.shape_cast %11 : vector<1x16x16xf32> to vector<16x16xf32>
    %c0_86 = arith.constant 0 : index
    %c0_87 = arith.constant 0 : index
    %89 = vector.load %arg10[%c0_86, %c0_87] : memref<16x32xf32, #tpu.memory_space<vmem>>, vector<16x32xf32>
    %cst_88 = arith.constant dense<0.000000e+00> : vector<16x32xf32>
    %90 = tpu.matmul %88, %89, %cst_88 {dimension_numbers = #tpu.dot_dimension_numbers<[1], [0], [0], [1], [0, 0, 1, 1], [], []>} : vector<16x16xf32>, vector<16x32xf32>, vector<16x32xf32> -> vector<16x32xf32>
    %91 = vector.shape_cast %90 : vector<16x32xf32> to vector<1x16x32xf32>
    %92 = arith.addf %87, %91 : vector<1x16x32xf32>
    %c0_89 = arith.constant 0 : index
    %c0_90 = arith.constant 0 : index
    %c0_91 = arith.constant 0 : index
    %93 = vector.load %arg11[%c0_89, %c0_90, %c0_91] : memref<1x16x32xf32, #tpu.memory_space<vmem>>, vector<1x16x32xf32>
    tpu.vector_store %arg11[%c0_89, %c0_90, %c0_91], %92 {strides = array<i32>} : memref<1x16x32xf32, #tpu.memory_space<vmem>>, vector<1x16x32xf32>,
    return
  }
  func.func @transform_0(%arg0: i32) -> (i32, i32, i32, i32) {
    %c0_i32 = arith.constant 0 : i32
    %c0_i32_0 = arith.constant 0 : i32
    %c0_i32_1 = arith.constant 0 : i32
    %c0_i32_2 = arith.constant 0 : i32
    return %arg0, %c0_i32, %c0_i32_0, %c0_i32_1 : i32, i32, i32, i32
  }
  func.func @transform_1(%arg0: i32) -> (i32, i32) {
    %c0_i32 = arith.constant 0 : i32
    %c0_i32_0 = arith.constant 0 : i32
    %c0_i32_1 = arith.constant 0 : i32
    return %c0_i32, %c0_i32_0 : i32, i32
  }
  func.func @transform_2(%arg0: i32) -> (i32, i32) {
    %c0_i32 = arith.constant 0 : i32
    %c0_i32_0 = arith.constant 0 : i32
    %c0_i32_1 = arith.constant 0 : i32
    return %c0_i32, %c0_i32_0 : i32, i32
  }
  func.func @transform_3(%arg0: i32) -> (i32, i32, i32) {
    %c0_i32 = arith.constant 0 : i32
    %c0_i32_0 = arith.constant 0 : i32
    %c0_i32_1 = arith.constant 0 : i32
    %c0_i32_2 = arith.constant 0 : i32
    return %c0_i32, %c0_i32_0, %c0_i32_1 : i32, i32, i32
  }
  func.func @transform_4(%arg0: i32) -> (i32, i32) {
    %c0_i32 = arith.constant 0 : i32
    %c0_i32_0 = arith.constant 0 : i32
    %c0_i32_1 = arith.constant 0 : i32
    return %c0_i32, %c0_i32_0 : i32, i32
  }
  func.func @transform_5(%arg0: i32) -> (i32, i32) {
    %c0_i32 = arith.constant 0 : i32
    %c0_i32_0 = arith.constant 0 : i32
    %c0_i32_1 = arith.constant 0 : i32
    return %c0_i32, %c0_i32_0 : i32, i32
  }
  func.func @transform_6(%arg0: i32) -> (i32, i32, i32) {
    %c0_i32 = arith.constant 0 : i32
    %c0_i32_0 = arith.constant 0 : i32
    %c0_i32_1 = arith.constant 0 : i32
    %c0_i32_2 = arith.constant 0 : i32
    return %c0_i32, %c0_i32_0, %c0_i32_1 : i32, i32, i32
  }
  func.func @transform_7(%arg0: i32) -> (i32, i32) {
    %c0_i32 = arith.constant 0 : i32
    %c0_i32_0 = arith.constant 0 : i32
    %c0_i32_1 = arith.constant 0 : i32
    return %c0_i32, %c0_i32_0 : i32, i32
  }
  func.func @transform_8(%arg0: i32) -> (i32, i32) {
    %c0_i32 = arith.constant 0 : i32
    %c0_i32_0 = arith.constant 0 : i32
    %c0_i32_1 = arith.constant 0 : i32
    return %c0_i32, %c0_i32_0 : i32, i32
  }
  func.func @transform_9(%arg0: i32) -> (i32, i32) {
    %c0_i32 = arith.constant 0 : i32
    %c0_i32_0 = arith.constant 0 : i32
    %c0_i32_1 = arith.constant 0 : i32
    return %c0_i32, %c0_i32_0 : i32, i32
  }
  func.func @transform_10(%arg0: i32) -> (i32, i32, i32) {
    %c0_i32 = arith.constant 0 : i32
    %c0_i32_0 = arith.constant 0 : i32
    %c0_i32_1 = arith.constant 0 : i32
    return %arg0, %c0_i32, %c0_i32_0 : i32, i32, i32
  }
}

</mosaic_0001>

<bundles_post_ra>
// kernel: tpu_custom_call.1
= control target key start
LH: loop header
LB: loop body
LE: loop exit
PB: predicated region body
PF: predicated region fallthrough
CT: control target
= control target key end

     0   :  { %s2390_s0 = inlined_call_operand.hbm [shape: f32[2,2,16,16], index: 0, kind: input, shape index: {}]   ;;  %s2391_s1 = inlined_call_operand.vmem [shape: f32[1,16], index: 1, kind: input, shape index: {}]   ;;  %s2392_s2 = inlined_call_operand.vmem [shape: f32[1,16], index: 2, kind: input, shape index: {}]   ;;  %s2393_s3 = inlined_call_operand.vmem [shape: f32[3,16,32], index: 3, kind: input, shape index: {}]   ;;  %s2394_s4 = inlined_call_operand.hbm [shape: f32[1,32], index: 4, kind: input, shape index: {}]   ;;  %s2395_s5 = inlined_call_operand.hbm [shape: f32[1,32], index: 5, kind: input, shape index: {}]   ;;  %s2396_s6 = inlined_call_operand.hbm [shape: f32[3,32,32], index: 6, kind: input, shape index: {}]   ;;  %s2397_s7 = inlined_call_operand.vmem [shape: f32[32,8], index: 7, kind: input, shape index: {}]   ;;  %s2398_s8 = inlined_call_operand.hbm [shape: f32[8,32], index: 8, kind: input, shape index: {}]   ;;  %s2399_s9 = inlined_call_operand.vmem [shape: f32[16,32], index: 9, kind: input, shape index: {}]   ;;  %s2400_s10 = inlined_call_operand.hbm [shape: f32[2,16,32], index: 10, kind: output, shape index: {}]  }
   0x1   :  { %2407 = sst [smem:[#allocation20_spill]] %s2394_s4 }
   0x2   :  { %15 = vsyncpa [#allocation5], 0 }
   0x3   :  { %17 = vsyncpa [#allocation5 + $0x1], 0 }
   0x4   :  { %18 = vsyncpa [#allocation8], 0 }
   0x5   :  { %19 = vsyncpa [#allocation11], 0 }
   0x6   :  { %20 = vsyncpa [#allocation6], 0 }
   0x7   :  { %22 = vsyncpa [#allocation6 + $0x1], 0  ;;  %s2018_s13 = smov 0   ;;  %s2020_s14 = smov 0  }
   0x8   :  { %s2022_s15 = smov 0   ;;  %s2024_s16 = smov 0  }
   0x9 LB: > { %2408 = sst [smem:[#allocation18_spill]] %s1936_s13  ;;  %s2039_s17 = sadd.s32 4294967295, %s1948_s16   ;;  %s1948_s16 = sphi %s2024_s16, %s2433_s16   ;;  %s1944_s15 = sphi %s2022_s15, %s2432_s15   ;;  %s1940_s14 = sphi %s2020_s14, %s2431_s14   ;;  %s1936_s13 = sphi %s2018_s13, %s2430_s13  }
   0xa   : > { %s1413_s18 = sadd.s32 4294967294, %s1948_s16   ;;  %p48_p0 = scmp.ne.s32.totalorder %s1940_s14, %s1936_s13 }
   0xb   : > { %p2401_p1 = scmp.eq.s32.totalorder %s2039_s17, 0  ;;  %p267_p3 = scmp.eq.s32.totalorder %s1413_s18, 1 }
   0xc   : > { %p1414_p5 = scmp.ge.s32.totalorder %s1948_s16, 1  ;;  %p274_p7 = scmp.lt.s32.totalorder %s1948_s16, 3 }
   0xd   : > { %p2048_p4 = por %p2401_p1, %p48_p0  ;;  %p2053_p6 = por %p267_p3, %p48_p0 }
   0xe   : > { %p2058_p8 = pnand %p1414_p5, %p274_p7  ;;  %s1950_s22 = smov [#allocation7]  }
   0xf   : > { %s2409_s19 = scalar_select %p2048_p4, 1, 0 }
  0x10   : > { %s2410_s20 = scalar_select %p2053_p6, 1, 0 }
  0x11   : > { %s2412_s21 = scalar_select %p2058_p8, 1, 0 }
  0x12   : > { %2411 = sst [smem:[#allocation19_spill]] %s2410_s20  ;;  %s296_s23 = sshll.u32 %s1950_s22, 4  ;;  %s297_s23 = int_to_ptr.vmem [resolvable:$true] %s296_s23 }
  0x13   : > { %p1654_p10 = pneg %p2058_p8  ;;  %s1951_s24 = smov [#allocation10]  }
  0x14   : > { %s317_s25 = sshll.u32 %s1951_s24, 4  ;;  %s1952_s27 = smov [#allocation9]   ;;  %s2071_s25 = int_to_ptr.vmem [resolvable:$true] %s317_s25 }
  0x15   : > { %p2067_p11 = pnand %p1654_p10, %p2401_p1  ;;  %s2073_s28 = sshll.u32 %s1952_s27, 4  ;;  %s308_s28 = int_to_ptr.vmem [resolvable:$true] %s2073_s28 }
  0x16   : > { %s2414_s4 = sld [smem:[#allocation20_spill]] }
  0x17   : > { %p2083_p13 = pneg %p2067_p11 }
  0x1c   : > { %s1732_s11 = scalar_lea.hbm %s2414_s4, 16 }
  0x1d   : > { %p1733_p12 = scmp.ne.s32.totalorder %s2414_s4, %s1732_s11  ;;  %p1739_p5 = scmp.lt.u32.totalorder %s1732_s11, %s2414_s4 }
  0x1f   : > { %p1735_p0 = pnand %p2083_p13, %p1733_p12 }
  0x21   : > { %p1736_p3 = pneg %p1735_p0 }
  0x23   : > { %p1741_p7 = pnand %p1739_p5, %p1736_p3 }
  0x25   : > { %1744 = shalt.err (!%p1741_p7)
}
  0x26   : > { %s1745_s29 = scalar_lea.vmem %s297_s23, 16  ;;  %s1752_s30 = scalar_lea.vmem %s297_s23, 32 }
  0x27   : > { %p1746_p10 = scmp.ne.s32.totalorder %s297_s23, %s1745_s29  ;;  %p1753_p2 = scmp.lt.s32.totalorder %s297_s23, %s297_s23 }
  0x28   : > { %p1754_p6 = scmp.lt.s32.totalorder %s1752_s30, %s1745_s29 }
  0x29   : > { %p1748_p9 = pnand %p1746_p10, %p2083_p13 }
  0x2a   : > { %p1755_p4 = por %p1754_p6, %p1753_p2 }
  0x2b   : > { %p1749_p1 = pneg %p1748_p9 }
  0x2d   : > { %p1756_p8 = pnand %p1755_p4, %p1749_p1 }
  0x2f   : > { %1759 = shalt.err (!%p1756_p8)
}
  0x30   : > { %1657 = dma.hbm_to_vmem [thread:$0]  (!%p2067_p11), %s2414_s4, 16, %s297_s23, [#allocation8]  }
  0x31   : > { %s1760_s27 = scalar_lea.hbm %s2396_s6, 1536 }
  0x32   : > { %p1761_p9 = scmp.ne.s32.totalorder %s2396_s6, %s1760_s27  ;;  %p1767_p1 = scmp.lt.u32.totalorder %s1760_s27, %s2396_s6 }
  0x34   : > { %p1763_p12 = pnand %p1761_p9, %p2083_p13 }
  0x36   : > { %p1764_p2 = pneg %p1763_p12 }
  0x38   : > { %p1769_p4 = pnand %p1767_p1, %p1764_p2 }
  0x3a   : > { %1772 = shalt.err (!%p1769_p4)
}
  0x3b   : > { %s1773_s23 = scalar_lea.vmem %s2071_s25, 1536  ;;  %p1781_p3 = scmp.lt.s32.totalorder %s2071_s25, %s2071_s25 }
  0x3c   : > { %p1774_p6 = scmp.ne.s32.totalorder %s2071_s25, %s1773_s23  ;;  %p1782_p5 = scmp.lt.s32.totalorder %s1773_s23, %s1773_s23 }
  0x3e   : > { %p1776_p8 = pnand %p1774_p6, %p2083_p13  ;;  %p1783_p7 = por %p1782_p5, %p1781_p3 }
  0x40   : > { %p1777_p0 = pneg %p1776_p8 }
  0x42   : > { %p1784_p10 = pnand %p1783_p7, %p1777_p0 }
  0x44   : > { %1787 = shalt.err (!%p1784_p10)
}
  0x45   : > { %s2406_s13 = smov 128   ;;  %s1954_s20 = smov 8  }
  0x46   : > { %1663 = dma.hbm_to_vmem [thread:$0]  (!%p2067_p11), %s2396_s6, 1536, %s2071_s25, [#allocation11], %s2406_s13, %s2406_s13, %s1954_s20  }
  0x47   : > { %s1788_s27 = scalar_lea.hbm %s2395_s5, 16 }
  0x48   : > { %p1789_p9 = scmp.ne.s32.totalorder %s2395_s5, %s1788_s27  ;;  %p1795_p1 = scmp.lt.u32.totalorder %s1788_s27, %s2395_s5 }
  0x4a   : > { %p1791_p12 = pnand %p1789_p9, %p2083_p13 }
  0x4c   : > { %p1792_p2 = pneg %p1791_p12 }
  0x4e   : > { %p1797_p4 = pnand %p1795_p1, %p1792_p2 }
  0x50   : > { %1800 = shalt.err (!%p1797_p4)
}
  0x51   : > { %s1801_s12 = scalar_lea.vmem %s308_s28, 16  ;;  %s1808_s25 = scalar_lea.vmem %s308_s28, 32 }
  0x52   : > { %p1802_p6 = scmp.ne.s32.totalorder %s308_s28, %s1801_s12  ;;  %p1809_p3 = scmp.lt.s32.totalorder %s308_s28, %s308_s28 }
  0x53   : > { %p1810_p5 = scmp.lt.s32.totalorder %s1808_s25, %s1801_s12 }
  0x54   : > { %p1804_p8 = pnand %p1802_p6, %p2083_p13 }
  0x55   : > { %p1811_p7 = por %p1810_p5, %p1809_p3 }
  0x56   : > { %p1805_p0 = pneg %p1804_p8 }
  0x58   : > { %p1812_p10 = pnand %p1811_p7, %p1805_p0 }
  0x5a   : > { %1815 = shalt.err (!%p1812_p10)
}
  0x5b   : > { %1660 = dma.hbm_to_vmem [thread:$0]  (!%p2067_p11), %s2395_s5, 16, %s308_s28, [#allocation8]  }
  0x5c   : > { %s1955_s4 = smov [#allocation12]   ;;  %s1816_s30 = scalar_lea.hbm %s2398_s8, 128 }
  0x5d   : > { %s334_s24 = sshll.u32 %s1955_s4, 4  ;;  %p1817_p9 = scmp.ne.s32.totalorder %s2398_s8, %s1816_s30  ;;  %s335_s24 = int_to_ptr.vmem [resolvable:$true] %s334_s24 }
  0x5e   : > { %p1823_p1 = scmp.lt.u32.totalorder %s1816_s30, %s2398_s8 }
  0x5f   : > { %p1819_p12 = pnand %p1817_p9, %p2083_p13 }
  0x61   : > { %p1820_p2 = pneg %p1819_p12 }
  0x63   : > { %p1825_p4 = pnand %p1823_p1, %p1820_p2 }
  0x65   : > { %1828 = shalt.err (!%p1825_p4)
}
  0x66   : > { %s1829_s28 = scalar_lea.vmem %s335_s24, 128  ;;  %p1837_p3 = scmp.lt.s32.totalorder %s335_s24, %s335_s24 }
  0x67   : > { %p1830_p6 = scmp.ne.s32.totalorder %s335_s24, %s1829_s28  ;;  %p1838_p5 = scmp.lt.s32.totalorder %s1829_s28, %s1829_s28 }
  0x69   : > { %p1832_p8 = pnand %p1830_p6, %p2083_p13  ;;  %p1839_p7 = por %p1838_p5, %p1837_p3 }
  0x6b   : > { %p1833_p0 = pneg %p1832_p8 }
  0x6d   : > { %p1840_p10 = pnand %p1839_p7, %p1833_p0 }
  0x6f   : > { %1843 = shalt.err (!%p1840_p10)
}
  0x70   : > { %1666 = dma.hbm_to_vmem [thread:$0]  (!%p2067_p11), %s2398_s8, 128, %s335_s24, [#allocation11]  }
  0x71   : > { %s2163_s22 = sadd.s32 1, %s1948_s16   ;;  %s35_s11 = sadd.s32 1, %s1944_s15 }
  0x72   : > { %s32_s26 = ssub.s32 %s1948_s16, %s2163_s22  ;;  %p42_p13 = scmp.ne.s32.totalorder %s1944_s15, %s1940_s14 }
  0x73   : > { %p33_p9 = scmp.eq.s32.totalorder %s32_s26, 0  ;;  %p43_p12 = scmp.eq.s32.totalorder %s1948_s16, 0 }
  0x74   : > { %p2416_p2 = scmp.eq.s32.totalorder %s2039_s17, 1  ;;  %p1679_p4 = scmp.lt.s32.totalorder %s1948_s16, 2 }
  0x75   : > { %s2179_s27 = scalar_select %p33_p9, %s1944_s15, %s35_s11  }
  0x76   : > { %p2173_p1 = por %p2416_p2, %p42_p13  ;;  %p44_p6 = por %p43_p12, %p42_p13 }
  0x77   : > { %s348_s29 = sand.u32 1, %s1944_s15   ;;  %s1460_s24 = sshll.u32 %s1948_s16, 9 }
  0x78   : > { %s1420_s30 = sshll.u32 %s348_s29, 5  ;;  %s2186_s25 = scalar_lea.hbm %s2390_s0, %s1460_s24 }
  0x79   : > { %s352_s28 = scalar_lea.vmem [#allocation4], %s1420_s30  ;;  %p2190_p11 = pnand %p1679_p4, %p44_p6 }
  0x7a   : > { %s359_s13 = sshll.u32 %s352_s28, 4  ;;  %s2194_s11 = scalar_lea.sflag [#allocation5], %s348_s29  ;;  %s2188_s13 = int_to_ptr.vmem [resolvable:$true] %s359_s13 }
  0x7b   : > { %s1844_s26 = scalar_lea.hbm %s2186_s25, 512  ;;  %p1846_p0 = pneg %p2190_p11 }
  0x7c   : > { %p1845_p8 = scmp.ne.s32.totalorder %s2186_s25, %s1844_s26  ;;  %s1849_s23 = scalar_lea.hbm %s2390_s0, 1024 }
  0x7d   : > { %p1850_p7 = scmp.lt.u32.totalorder %s2186_s25, %s2390_s0  ;;  %p1851_p10 = scmp.lt.u32.totalorder %s1849_s23, %s1844_s26 }
  0x7e   : > { %p1847_p3 = pnand %p1846_p0, %p1845_p8  ;;  %p1853_p9 = scmp.lt.u32.totalorder %s1844_s26, %s2186_s25 }
  0x7f   : > { %p1852_p13 = por %p1851_p10, %p1850_p7 }
  0x80   : > { %p1848_p5 = pneg %p1847_p3 }
  0x81   : > { %p1854_p12 = por %p1853_p9, %p1852_p13 }
  0x83   : > { %p1855_p2 = pnand %p1854_p12, %p1848_p5 }
  0x85   : > { %1858 = shalt.err (!%p1855_p2)
}
  0x86   : > { %s1859_s29 = scalar_lea.vmem %s2188_s13, 512  ;;  %s1956_s30 = smov [#allocation4]  }
  0x87   : > { %p1860_p4 = scmp.ne.s32.totalorder %s2188_s13, %s1859_s29  ;;  %s1864_s24 = sshll.u32 %s1956_s30, 4  ;;  %s1865_s24 = int_to_ptr.vmem [resolvable:$false] %s1864_s24 }
  0x88   : > { %s1866_s12 = scalar_lea.vmem %s1865_s24, 1024  ;;  %p1867_p3 = scmp.lt.s32.totalorder %s2188_s13, %s1865_s24 }
  0x89   : > { %p1862_p6 = pnand %p1860_p4, %p1846_p0  ;;  %p1868_p7 = scmp.lt.s32.totalorder %s1866_s12, %s1859_s29 }
  0x8b   : > { %p1863_p8 = pneg %p1862_p6  ;;  %p1869_p10 = por %p1868_p7, %p1867_p3 }
  0x8d   : > { %p1870_p13 = pnand %p1869_p10, %p1863_p8 }
  0x8f   : > { %1873 = shalt.err (!%p1870_p13)
}
  0x90   : > { %s2419_s26 = smov 128   ;;  %p2420_p0 = scmp.ne.s32.totalorder %s2412_s21, 0 }
  0x91   : > { %1670 = dma.hbm_to_vmem [thread:$0]  (!%p2190_p11), %s2186_s25, 512, %s2188_s13, %s2194_s11, %s2419_s26, %s2419_s26, %s1954_s20  }
  0x92   : > { %371 = sbr.rel (%p2420_p0) target bundleno = 1141 (0x475), region = 60  ;;  %s2228_s23 = sand.u32 (!%p2420_p0), 1, %s1940_s14  }
  0x93   : > { %s1424_s28 = sshll.u32 (!%p2420_p0), %s2228_s23, 5  ;;  %s374_s29 = scalar_lea.sflag (!%p2420_p0), [#allocation5], %s2228_s23 }
  0x94   : > { %s377_s30 = scalar_lea.vmem (!%p2420_p0), [#allocation4], %s1424_s28  ;;  %p2421_p5 = scmp.ne.s32.totalorder (!%p2420_p0), %s2409_s19, 0 }
  0x99   : > { %1919 = dma.done.wait (%p2421_p5), %s374_s29, 512  }
  0x9a   : > { %1921 = vsyncadd (%p2421_p5), %s374_s29, 4294966784  ;;  %p2422_p9 = scmp.eq.s32.totalorder %s2039_s17, 0 }
  0x9c   : > { %1923 = dma.done.wait (%p2422_p9), [#allocation8], 32   ;;  %p2423_p11 = pmov %p2422_p9 }
  0x9d   : > { %p2424_p12 = pmov %p2422_p9 }
  0x9e   : > { %1925 = vsyncadd (%p2423_p11), [#allocation8], 4294967264 }
  0x9f   : > { %1927 = dma.done.wait (%p2424_p12), [#allocation11], 1664   ;;  %p2425_p2 = pmov %p2422_p9 }
  0xa0   : > { %vm467_vm0 = vcmask 122880   ;;  %v1957_v0 = vmov 0.0   ;;  %v1432_v1 = vld [vmem:[%s2393_s3 + $0x10] sm:$0xff]  ;;  %v1433_v2 = vld [vmem:[%s2393_s3 + $0x18] sm:$0xff]  ;;  %v1430_v5 = vld [vmem:[%s2391_s1] ss:$0 sm:$0xff] }
  0xa1   : > { %1929 = vsyncadd (%p2425_p2), [#allocation11], 4294965632  ;;  %468 = vst.msk [vmem:[#allocation2 + $0x10] sm:$0x1] %vm467_vm0, %v1957_v0  ;;  %v2251_v3 = vld [vmem:[%s377_s30 + $0x10] sm:$0xff]  ;;  %v1580_v4 = vpack.c.bf16 %v1433_v2, %v1432_v1  ;;  %v476_v7 = vld [vmem:[%s2393_s3] sm:$0xff] }
  0xa2   : > { %v1431_v6 = vld [vmem:[%s2392_s2] ss:$0 sm:$0xff]  ;;  %v443_v8 = vmul.f32 %v1430_v5, %v2251_v3  ;;  %v477_v9 = vld [vmem:[%s2393_s3 + $0x8] sm:$0xff]  ;;  %v2272_v15 = vld [vmem:[%s377_s30 + $0x8] sm:$0xff]  ;;  %vm460_vm1 = vcmask 130048   ;;  %vm754_vm2 = vcmask 253952  }
  0xa3   : > { %v2266_v10 = vld [vmem:[%s377_s30 + $0x18] sm:$0xff]  ;;  %v2268_v11 = vld [vmem:[%s377_s30] sm:$0xff]  ;;  %1581 = vmatprep.subr.bf16.mxu0 %v1580_v4  ;;  %v1584_v12 = vpack.c.bf16 %v477_v9, %v476_v7  ;;  %v442_v17 = vmul.f32 %v1430_v5, %v2272_v15  ;;  %v770_v35 = vld [vmem:[#allocation10 + $0x28] sm:$0xff]  ;;  %755 = vst.msk [vmem:[#allocation3] sm:$0x1] %vm754_vm2, %v1957_v0  ;;  %vm757_vm3 = vcmask 261120  }
  0xa4   : > { %v444_v13 = vmul.f32 %v1430_v5, %v2266_v10  ;;  %v441_v14 = vmul.f32 %v1430_v5, %v2268_v11  ;;  %1583 = vmatpush3.bf16.msra.mxu0 %v1580_v4  ;;  %v454_v16 = vadd.f32 %v1431_v6, %v443_v8  ;;  %v1438_v25 = vld [vmem:[%s2393_s3 + $0x20] sm:$0xff]  ;;  %v1439_v26 = vld [vmem:[%s2393_s3 + $0x28] sm:$0xff]  ;;  %756 = vst.msk [vmem:[#allocation3 + $0x11] sm:$0x1] %vm754_vm2, %v1957_v0  ;;  %v763_v41 = vld [vmem:[#allocation10 + $0x8] sm:$0xff]  ;;  %v1958_v9 = vmov 0.0|0.0  }
  0xa5   : > { %1585 = vmatprep.subr.bf16.mxu0 %v1584_v12  ;;  %v453_v21 = vadd.f32 %v1431_v6, %v442_v17  ;;  %v1588_v28 = vpack.c.bf16 %v1439_v26, %v1438_v25  ;;  %v769_v34 = vld [vmem:[#allocation10 + $0x20] sm:$0xff]  ;;  %v771_v37 = vld [vmem:[#allocation10 + $0x30] sm:$0xff]  ;;  %v772_v38 = vld [vmem:[#allocation10 + $0x38] sm:$0xff]  ;;  %vm1959_vm4 = vmmov 0   ;;  %vm1115_vm5 = vcmask 64512   ;;  %s1429_s19 = sshll.u32 %s2228_s23, 4 }
  0xa6   : > { %v455_v18 = vadd.f32 %v1431_v6, %v444_v13  ;;  %v452_v19 = vadd.f32 %v1431_v6, %v441_v14  ;;  %v458_v20 = vmax.f32 %v454_v16, 0.0  ;;  %v1592_v36 = vpack.c.bf16 %v770_v35, %v769_v34  ;;  %v762_v40 = vld [vmem:[#allocation10] sm:$0xff]  ;;  %v1442_v43 = vld [vmem:[#allocation7] ss:$0 sm:$0xff]  ;;  %v1443_v45 = vld [vmem:[#allocation9] ss:$0 sm:$0xff] }
  0xa7   : > { %v457_v24 = vmax.f32 %v453_v21, 0.0  ;;  %v1596_v39 = vpack.c.bf16 %v772_v38, %v771_v37  ;;  %v1600_v42 = vpack.c.bf16 %v763_v41, %v762_v40  ;;  %v764_v53 = vld [vmem:[#allocation10 + $0x10] sm:$0xff]  ;;  %v765_v54 = vld [vmem:[#allocation10 + $0x18] sm:$0xff]  ;;  %v938_v58 = vld [vmem:[#allocation10 + $0x40] sm:$0xff]  ;;  %s429_s25 = scalar_lea.vmem [#allocation13], %s1429_s19  ;;  %s1461_s18 = sshll.u32 %s2039_s17, 8 }
  0xa8   : > { %v459_v22 = vmax.f32 %v455_v18, 0.0  ;;  %v456_v23 = vmax.f32 %v452_v19, 0.0  ;;  %472 = vst.msk [vmem:[#allocation2 + $0x18] sm:$0xff] %vm460_vm1, %v458_v20  ;;  %1593 = vmatprep.subr.bf16.mxu1 %v1592_v36  ;;  %v1604_v56 = vpack.c.bf16 %v765_v54, %v764_v53  ;;  %v939_v59 = vld [vmem:[#allocation10 + $0x48] sm:$0xff]  ;;  %v940_v62 = vld [vmem:[#allocation10 + $0x50] sm:$0xff]  ;;  %v941_v63 = vld [vmem:[#allocation10 + $0x58] sm:$0xff]  ;;  %s2344_s12 = scalar_lea.hbm %s2400_s10, %s1461_s18 }
  0xa9   : > { %471 = vst.msk [vmem:[#allocation2 + $0x8] sm:$0xff] %vm460_vm1, %v457_v24  ;;  %1595 = vmatpush3.bf16.msra.mxu1 %v1592_v36  ;;  %v1608_v61 = vpack.c.bf16 %v939_v59, %v938_v58  ;;  %v1612_v1 = vpack.c.bf16 %v941_v63, %v940_v62  ;;  %v1036_v6 = vld [vmem:[%s2397_s7] sm:$0xff]  ;;  %v1037_v7 = vld [vmem:[%s2397_s7 + $0x8] sm:$0xff]  ;;  %v1039_v13 = vld [vmem:[%s2397_s7 + $0x18] sm:$0xff]  ;;  %v465_v36 = vsel %vm460_vm1, %v2266_v10, -inf  ;;  %v1195_v10 = vlaneseq  ;;  %s1302_s13 = sshll.u32 %s429_s25, 4  ;;  %s2339_s13 = int_to_ptr.vmem [resolvable:$true] %s1302_s13 }
  0xaa   : > { %473 = vst.msk [vmem:[#allocation2 + $0x20] sm:$0xff] %vm460_vm1, %v459_v22  ;;  %470 = vst.msk [vmem:[#allocation2] sm:$0xff] %vm460_vm1, %v456_v23  ;;  %1597 = vmatprep.subr.bf16.mxu1 %v1596_v39  ;;  %v1617_v8 = vpack.c.bf16 %v1037_v7, %v1036_v6  ;;  %s1289_s26 = scalar_lea.sflag [#allocation6], %s2228_s23  ;;  %s1874_s17 = scalar_lea.vmem %s2339_s13, 256 }
  0xab   : > { %p1875_p4 = scmp.ne.s32.totalorder %s2339_s13, %s1874_s17  ;;  %s1960_s28 = smov [#allocation13]  }
  0xac   : > { %s1878_s29 = sshll.u32 %s1960_s28, 4  ;;  %s1879_s29 = int_to_ptr.vmem [resolvable:$false] %s1878_s29 }
  0xad   : > { %1599 = vmatpush3.bf16.msra.mxu1 %v1596_v39  ;;  %p1876_p6 = pnand %p1875_p4, %p2173_p1  ;;  %s1880_s30 = scalar_lea.vmem %s1879_s29, 512 }
  0xae   : > { %1601 = vmatprep.subr.bf16.mxu1 %v1600_v42  ;;  %p1881_p3 = scmp.lt.s32.totalorder %s2339_s13, %s1879_s29  ;;  %p1882_p7 = scmp.lt.s32.totalorder %s1880_s30, %s1874_s17 }
  0xaf   : > { %v479_v27 = vld [vmem:[#allocation2 + $0x18] sm:$0xff]  ;;  %p1877_p8 = pneg %p1876_p6 }
  0xb0   : > { %1507 = vmatprep.mubr.msk.f32.mxu0 %vm460_vm1, %v479_v27  ;;  %v475_v31 = vld [vmem:[#allocation2 + $0x8] sm:$0xff]  ;;  %p1883_p10 = por %p1882_p7, %p1881_p3 }
  0xb1   : > { %v480_v29 = vld [vmem:[#allocation2 + $0x20] sm:$0xff]  ;;  %v647_v33 = vld [vmem:[#allocation2 + $0x9] sm:$0xff] }
  0xb2   : > { %v474_v30 = vld [vmem:[#allocation2] sm:$0xff]  ;;  %1508 = vmatmul.mubr.msk.f32.vlgmr.msra.gmra.mrb[0].mxu0 %vm460_vm1, %v480_v29  ;;  %p1884_p13 = pnand %p1883_p10, %p1877_p8 }
  0xb3   : > { %1587 = vmatpush3.bf16.msra.mxu0 %v1584_v12  ;;  %1514 = vmatprep.mubr.msk.f32.mxu0 %vm460_vm1, %v474_v30  ;;  %v646_v32 = vld [vmem:[#allocation2 + $0x1] sm:$0xff]  ;;  %v1038_v12 = vld [vmem:[%s2397_s7 + $0x10] sm:$0xff] }
  0xb4   : > { %1589 = vmatprep.subr.bf16.mxu0 %v1588_v28  ;;  %v1620_v14 = vpack.c.bf16 %v1039_v13, %v1038_v12  ;;  %v1201_v29 = vld [vmem:[%s2399_s9] sm:$0xff]  ;;  %v1202_v30 = vld [vmem:[%s2399_s9 + $0x8] sm:$0xff] }
  0xba   : > { %1515 = vmatmul.mubr.msk.f32.vlgmr.msra.gmra.mrb[0].mxu0 %vm460_vm1, %v475_v31  ;;  %v1622_v31 = vpack.c.bf16 %v1202_v30, %v1201_v29 }
  0xbb   : > { %1591 = vmatpush3.bf16.msra.mxu0 %v1588_v28  ;;  %1521 = vmatprep.mubr.msk.f32.mxu0 %vm460_vm1, %v646_v32  ;;  %v1114_v28 = vld [vmem:[#allocation12] sm:$0xff]  ;;  %v461_v32 = vsel %vm460_vm1, %v2268_v11, -inf }
  0xbc   : > { %1616 = vmatprep.subr.bf16.mxu0 %v1958_v9 }
  0xc2   : > { %1522 = vmatmul.mubr.msk.f32.vlgmr.msra.gmra.mrb[0].mxu0 %vm460_vm1, %v647_v33  ;;  %v462_v33 = vsel %vm460_vm1, %v2251_v3, -inf }
  0xc3   : > { %1618 = vmatpush3.bf16.msra.mxu0 %v1617_v8  ;;  %1565 = vmatprep.mubr.msk.f32.mxu0 %vm1959_vm4, %v1957_v0  ;;  %v463_v35 = vmax.f32 %v461_v32, %v462_v33 }
  0xc4   : > { %1619 = vmatprep.subr.bf16.mxu0 %v1958_v9 }
  0xc7   : > { %1621 = vmatpush3.bf16.msra.mxu0 %v1620_v14 }
  0xc8   : > { %1568 = vmatprep.subr.mxu0 %v1957_v0 }
 0x195   : > { %v1523_v44 = vpop.f32.mrb[0].mxu0 }
 0x196   : > { %v742_v46 = vmul.f32 %v1523_v44, %v1442_v43  ;;  %v723_v47 = vpop.f32.mrb[1].mxu0  ;;  %v1196_v44 = vshrl.u32 %v1195_v10, 7 }
 0x197   : > { %v741_v48 = vmul.f32 %v1442_v43, %v723_v47 }
 0x198   : > { %v751_v49 = vadd.f32 %v1443_v45, %v742_v46 }
 0x199   : > { %v750_v50 = vadd.f32 %v1443_v45, %v741_v48  ;;  %v1197_v45 = vsub.s32 0, %v1196_v44 }
 0x19a   : > { %v753_v51 = vmax.f32 %v751_v49, 0.0 }
 0x19b   : > { %v752_v52 = vmax.f32 %v750_v50, 0.0 }
 0x19c   : > { %759 = vst.msk [vmem:[#allocation3 + $0x9] sm:$0xff] %vm757_vm3, %v753_v51 }
 0x19d   : > { %758 = vst.msk [vmem:[#allocation3 + $0x1] sm:$0xff] %vm757_vm3, %v752_v52 }
 0x1a3   : > { %v767_v57 = vld [vmem:[#allocation3 + $0x9] sm:$0xff] }
 0x1a4   : > { %v766_v55 = vld [vmem:[#allocation3 + $0x1] sm:$0xff]  ;;  %v936_v5 = vld [vmem:[#allocation3 + $0xa] sm:$0xff] }
 0x1a5   : > { %1532 = vmatprep.mubr.msk.f32.mxu1 %vm757_vm3, %v766_v55  ;;  %v760_v60 = vld [vmem:[#allocation3] sm:$0xff]  ;;  %v761_v2 = vld [vmem:[#allocation3 + $0x8] sm:$0xff] }
 0x1a6   : > { %1533 = vmatmul.mubr.msk.f32.vlgmr.msra.gmra.mrb[0].mxu1 %vm757_vm3, %v767_v57  ;;  %v935_v4 = vld [vmem:[#allocation3 + $0x2] sm:$0xff] }
 0x1a7   : > { %1603 = vmatpush3.bf16.msra.mxu1 %v1600_v42  ;;  %1543 = vmatprep.mubr.msk.f32.mxu1 %vm757_vm3, %v760_v60 }
 0x1a8   : > { %1605 = vmatprep.subr.bf16.mxu1 %v1604_v56 }
 0x1ab   : > { %1607 = vmatpush3.bf16.msra.mxu1 %v1604_v56 }
 0x1ac   : > { %1609 = vmatprep.subr.bf16.mxu1 %v1608_v61 }
 0x1ae   : > { %1544 = vmatmul.mubr.msk.f32.vlgmr.msra.gmra.mrb[0].mxu1 %vm757_vm3, %v761_v2 }
 0x1af   : > { %1611 = vmatpush3.bf16.msra.mxu1 %v1608_v61  ;;  %1554 = vmatprep.mubr.msk.f32.mxu1 %vm757_vm3, %v935_v4 }
 0x1b0   : > { %1613 = vmatprep.subr.bf16.mxu1 %v1612_v1 }
 0x1b3   : > { %1615 = vmatpush3.bf16.msra.mxu1 %v1612_v1 }
 0x1b6   : > { %1555 = vmatmul.mubr.msk.f32.vlgmr.msra.gmra.mrb[0].mxu1 %vm757_vm3, %v936_v5 }
 0x289   : > { %v1556_v16 = vpop.f32.mrb[0].mxu1 }
 0x28a   : > { %v1026_v17 = vsel %vm757_vm3, %v1556_v16, 0.0  ;;  %v1014_v18 = vpop.f32.mrb[1].mxu1 }
 0x28b   : > { %v1025_v19 = vsel %vm757_vm3, %v1014_v18, 0.0 }
 0x28c   : > { %v1027_v20 = vadd.f32 %v1026_v17, %v1025_v19 }
 0x28e   : > { %v1028_v21 = vrot.slane %v1027_v20, 4 }
 0x290   : > { %v1029_v22 = vadd.f32 %v1028_v21, %v1027_v20 }
 0x292   : > { %v1030_v23 = vrot.slane %v1029_v22, 2 }
 0x294   : > { %v1031_v24 = vadd.f32 %v1030_v23, %v1029_v22 }
 0x296   : > { %v1032_v25 = vrot.slane %v1031_v24, 1 }
 0x298   : > { %v1033_v26 = vadd.f32 %v1032_v25, %v1031_v24 }
 0x29a   : > { %v1035_v27 = vmul.f32 0.0625, %v1033_v26 }
 0x29c   : > { %1566 = vmatmul.mubr.msk.f32.vlgmr.msra.gmra.mrb[2].mxu0 %vm757_vm3, %v1035_v27 }
 0x29d   : > { %1569 = vmatpush3.msra.mxu0 %v1114_v28  ;;  %1570 = vmatprep.mubr.msk.f32.mxu0 %vm1959_vm4, %v1957_v0  ;;  %v464_v0 = vsel %vm460_vm1, %v2272_v15, -inf }
 0x29e   : > { %1623 = vmatprep.subr.bf16.mxu0 %v1622_v31  ;;  %v466_v39 = vmax.f32 %v464_v0, %v465_v36 }
 0x36f   : > { %v1109_v34 = vpop.f32.mrb[2].mxu0 }
 0x370   : > { %v1113_v37 = vmax.f32 %v1109_v34, 0.0  ;;  %v1567_v38 = vpop.f32.mrb[3].mxu0 }
 0x372   : > { %1571 = vmatmul.mubr.msk.f32.vlgmr.msra.gmra.mrb[4].mxu0 %vm1115_vm5, %v1113_v37 }
 0x373   : > { %1625 = vmatpush3.bf16.msra.mxu0 %v1622_v31  ;;  %1577 = vmatprep.mubr.msk.f32.mxu0 %vm460_vm1, %v463_v35 }
 0x376   : > { %1578 = vmatmul.mubr.msk.f32.vlgmr.msra.gmra.mrb[6].mxu0 %vm460_vm1, %v466_v39 }
 0x445   : > { %v1185_v3 = vpop.f32.mrb[4].mxu0 }
 0x446   : > { %v1452_v11 = vmul.f32 -1.442695, %v1185_v3  ;;  %v1572_v40 = vpop.f32.mrb[5].mxu0 }
 0x448   : > { %1728 = vpow2.f32 %v1452_v11 }
 0x449   : > { %v1579_v41 = vpop.f32.mrb[6].mxu0 }
 0x44a   : > { %v1275_v15 = vpop.f32.mrb[7].mxu0 }
 0x452   : > { %v1729_v42 = vpop.eup %1728 }
 0x453   : > { %v1192_v43 = vadd.f32 1.0, %v1729_v42 }
 0x455   : > { %1730 = vrcp.f32 %v1192_v43 }
 0x45f   : > { %v1731_v46 = vpop.eup %1730 }
 0x460   : > { %v1198_v47 = vrot.slane %v1731_v46, %v1197_v45 }
 0x462   : > { %v1200_v48 = vmul.f32 %v1556_v16, %v1198_v47  ;;  %v1199_v49 = vmul.f32 %v1198_v47, %v1014_v18 }
 0x464   : > { %v1285_v50 = vadd.f32 %v1579_v41, %v1200_v48  ;;  %v1284_v51 = vadd.f32 %v1275_v15, %v1199_v49 }
 0x466   : > { %1287 = vst.msk [vmem:[%s429_s25 + $0x8] sm:$0xff] %vm757_vm3, %v1285_v50  ;;  %1286 = vst.msk [vmem:[%s429_s25] sm:$0xff] %vm757_vm3, %v1284_v51 }
 0x467   : > { %1887 = shalt.err (!%p1884_p13)
}
 0x468   : > { %s1888_s21 = scalar_lea.hbm %s2344_s12, 256  ;;  %s1892_s25 = scalar_lea.hbm %s2400_s10, 512 }
 0x469   : > { %p1889_p0 = scmp.ne.s32.totalorder %s2344_s12, %s1888_s21  ;;  %p1893_p11 = scmp.lt.u32.totalorder %s2344_s12, %s2400_s10 }
 0x46a   : > { %p1894_p12 = scmp.lt.u32.totalorder %s1892_s25, %s1888_s21  ;;  %p1896_p4 = scmp.lt.u32.totalorder %s1888_s21, %s2344_s12 }
 0x46b   : > { %p1890_p5 = pnand %p1889_p0, %p2173_p1 }
 0x46c   : > { %p1895_p2 = por %p1894_p12, %p1893_p11 }
 0x46d   : > { %p1891_p9 = pneg %p1890_p5 }
 0x46e   : > { %p1897_p6 = por %p1896_p4, %p1895_p2 }
 0x470   : > { %p1898_p8 = pnand %p1897_p6, %p1891_p9 }
 0x472   : > { %1901 = shalt.err (!%p1898_p8)
}
 0x473   : > { %s1961_s24 = smov 128   ;;  %s1962_s17 = smov 8  }
 0x474   : > { %1652 = dma.vmem_to_hbm [thread:$0]  (%p2173_p1), %s2339_s13, 256, %s2344_s12, %s1289_s26, %s1961_s24, %s1961_s24, %s1962_s17  }
 0x475 PF: > { %s2426_s28 = sld [smem:[#allocation18_spill]]  ;;  %s2427_s29 = sld [smem:[#allocation19_spill]] }
 0x476   : > { %p2429_p7 = scmp.ge.s32.totalorder %s1948_s16, 2 }
 0x47b   : > { %s1317_s30 = sand.u32 1, %s2426_s28   ;;  %p2428_p3 = scmp.ne.s32.totalorder %s2427_s29, 0 }
 0x47c   : > { %s1318_s21 = scalar_lea.sflag [#allocation6], %s1317_s30 }
 0x47d   : > { %p1672_p10 = pnand %p2429_p7, %p2428_p3 }
 0x47f   : > { %1931 = dma.done.wait (!%p1672_p10), %s1318_s21, 256  }
 0x480   : > { %1933 = vsyncadd (!%p1672_p10), %s1318_s21, 4294967040  ;;  %p25_p13 = scmp.ge.s32.totalorder %s2163_s22, 4   ;;  %s2430_s13 = smov %s1940_s14 }
 0x481   : > { %s2431_s14 = smov %s1944_s15  ;;  %s2432_s15 = smov %s2179_s27 }
 0x482   : > { %s2433_s16 = smov %s2163_s22  ;;  %27 = sbr.rel (!%p25_p13) target bundleno = 9 (0x9), region = 126 }
 0x489   :  { %1323 = vsyncpa [#allocation5], 1 }
 0x48a   :  { %1325 = vsyncpa [#allocation5 + $0x1], 1 }
 0x48b   :  { %1326 = vsyncpa [#allocation8], 1 }
 0x48c   :  { %1327 = vsyncpa [#allocation11], 1 }
 0x48d   :  { %1328 = vsyncpa [#allocation6], 1 }
 0x48e   :  { %1330 = vsyncpa [#allocation6 + $0x1], 1 }

</bundles_post_ra>
